<compile_context>
chip_gen: v6e
topology: v6e:2x2x1
jax: 0.10.0
libtpu: 0.0.40
codegen_flags: <defaults>
</compile_context>

<pallas_src>
import functools

import numpy as np
import jax
import jax.numpy as jnp
from jax.experimental import pallas as pl
from jax.experimental.pallas import tpu as pltpu

# ----------------------------------------------------------------------------
# Small, module-consistent sizes (module constants T=4001, HIDDEN_UNIT=20 are
# shrunk for a runnable synthetic test).
# ----------------------------------------------------------------------------
T_LEN = 32          # plays the role of the module-level constant T
HIDDEN_UNIT = 8     # plays the role of the module-level constant HIDDEN_UNIT
BATCH = 2

CFG = dict(
    n_origin_channel=4,
    n_block_middle=8,
    incep_n_kernels=2,   # kernel sizes 1, 3 -> effective 3x3 averaged conv
    k=2,
    n_layers=1,
    drop_channels=[1],
    length=T_LEN,
)

_INV_SQRT2 = 0.7071067811865476
_LN_EPS = 1e-5


# ----------------------------------------------------------------------------
# Fused TimesBlock period branch:
#   stacked-tap GEMM (Cin->M) -> exact-erf GELU -> stacked-tap GEMM (M->Cin)
#   -> softmax-weighted residual add [-> LayerNorm over channels]
# ----------------------------------------------------------------------------
def _times_branch_kernel(x_ref, res_ref, pw_ref, m_ref, w1_ref, b1_ref,
                         w2_ref, b2_ref, g_ref, beta_ref, o_ref,
                         *, shifts, t_len, apply_ln):
    """x_ref : (1, Cin, L) f32   padded input, flat (H*W) tokens on lanes
       res_ref: (1, Cin, T) f32  running softmax-weighted residual sum
       pw_ref : (B, 1) f32 SMEM  per-batch softmax period weight
       m_ref  : (KK, 1, L) f32   per-tap validity masks (border/wrap -> 0)
       w1_ref : (M, KK*Cin) bf16 ; b1_ref: (M, 1) f32
       w2_ref : (Cin, KK*M) bf16 ; b2_ref: (Cin, 1) f32
       g_ref/beta_ref: (Cin, 1) f32 LayerNorm affine (used iff apply_ln)
       o_ref  : (1, Cin, T) f32
    """
    x = x_ref[0]                         # (Cin, L) f32
    L = x.shape[-1]
    masks = m_ref[...]                   # (KK, 1, L) f32, loaded once
    pw = pw_ref[pl.program_id(0), 0]     # scalar softmax weight from SMEM

    def circshift(v, s):
        # Circular shift of the flat token axis.  The per-tap mask zeroes
        # every wrapped / out-of-grid position, so this equals the zero-padded
        # conv tap; taking the shift mod L also handles |s| > L (period == T).
        s = s % L
        if s == 0:
            return v
        return jnp.concatenate([v[:, s:], v[:, :s]], axis=-1)

    def tap_stack(v):
        # (rows, L) -> (KK*rows, L): masked taps stacked on sublanes so each
        # conv is a single deep-K MXU GEMM instead of KK shallow dots + adds.
        return jnp.concatenate(
            [circshift(v, s) * masks[ki] for ki, s in enumerate(shifts)],
            axis=0)

    y = jnp.dot(w1_ref[...], tap_stack(x).astype(jnp.bfloat16),
                preferred_element_type=jnp.float32) + b1_ref[...]   # (M, L)
    y = 0.5 * y * (1.0 + jax.lax.erf(y * _INV_SQRT2))               # exact GELU
    z = jnp.dot(w2_ref[...], tap_stack(y).astype(jnp.bfloat16),
                preferred_element_type=jnp.float32) + b2_ref[...]   # (Cin, L)

    # softmax-weighted residual accumulation fused into the epilogue
    out = res_ref[0] + pw * z[:, :t_len]                            # (Cin, T)

    if apply_ln:   # LayerNorm over channels (sublane axis), fused on last branch
        mu = jnp.mean(out, axis=0, keepdims=True)
        var = jnp.mean((out - mu) ** 2, axis=0, keepdims=True)
        out = ((out - mu) * jax.lax.rsqrt(var + _LN_EPS)
               * g_ref[...] + beta_ref[...])

    o_ref[0] = out


@functools.lru_cache(maxsize=None)
def _build_branch_call(B, C, M, KK, L, t_len, shifts, apply_ln, donate):
    kernel = functools.partial(_times_branch_kernel, shifts=shifts,
                               t_len=t_len, apply_ln=apply_ln)
    return pl.pallas_call(
        kernel,
        out_shape=jax.ShapeDtypeStruct((B, C, t_len), jnp.float32),
        grid=(B,),
        in_specs=[
            pl.BlockSpec((1, C, L), lambda b: (b, 0, 0)),        # padded input
            pl.BlockSpec((1, C, t_len), lambda b: (b, 0, 0)),    # running residual
            pl.BlockSpec(memory_space=pltpu.MemorySpace.SMEM),   # softmax weights
            pl.BlockSpec((KK, 1, L), lambda b: (0, 0, 0)),       # tap masks
            pl.BlockSpec((M, KK * C), lambda b: (0, 0)),         # conv1 weights
            pl.BlockSpec((M, 1), lambda b: (0, 0)),              # conv1 bias
            pl.BlockSpec((C, KK * M), lambda b: (0, 0)),         # conv2 weights
            pl.BlockSpec((C, 1), lambda b: (0, 0)),              # conv2 bias
            pl.BlockSpec((C, 1), lambda b: (0, 0)),              # LN gamma
            pl.BlockSpec((C, 1), lambda b: (0, 0)),              # LN beta
        ],
        out_specs=pl.BlockSpec((1, C, t_len), lambda b: (b, 0, 0)),
        # write the running residual in place (branches > 0 only: branch 0's
        # residual base is the block input itself, still needed by later taps)
        input_output_aliases=({1: 0} if donate else {}),
        compiler_params=pltpu.CompilerParams(
            dimension_semantics=("parallel",)),   # shards batch over v7x's 2 TCs
    )


def fused_times_branch(x_pad, res, pw_col, masks, w1, b1, w2, b2, ln_g, ln_b,
                       *, shifts, apply_ln, donate):
    B, C, L = x_pad.shape
    KK = masks.shape[0]
    M = w1.shape[0]
    t_len = res.shape[-1]
    call = _build_branch_call(B, C, M, KK, L, t_len, tuple(shifts),
                              apply_ln, donate)
    return call(x_pad, res, pw_col, masks, w1, b1, w2, b2, ln_g, ln_b)


@functools.lru_cache(maxsize=None)
def _tap_masks(H, W, keff):
    """Per-tap validity masks over the flattened (H*W) axis (static numpy)."""
    p = (keff - 1) // 2
    L = H * W
    t = np.arange(L)
    h_idx, w_idx = t // W, t % W
    m = np.zeros((keff * keff, 1, L), np.float32)
    k = 0
    for kh in range(keff):
        for kw in range(keff):
            dh, dw = kh - p, kw - p
            valid = ((h_idx + dh >= 0) & (h_idx + dh < H) &
                     (w_idx + dw >= 0) & (w_idx + dw < W))
            m[k, 0, :] = valid
            k += 1
    return jnp.asarray(m)          # f32: no bf16 elementwise (v5e has no bf16 VALU)


@functools.lru_cache(maxsize=None)
def _tap_shifts(period, keff):
    p = (keff - 1) // 2
    return tuple((kh - p) * period + (kw - p)
                 for kh in range(keff) for kw in range(keff))


# ----------------------------------------------------------------------------
# Instance normalization over time (lane axis), whole batch in one invocation
# ----------------------------------------------------------------------------
def _instance_norm_kernel(x_ref, xn_ref, mean_ref, std_ref):
    x = x_ref[...]                                      # (B, C, T): T on lanes
    mu = jnp.mean(x, axis=-1, keepdims=True)
    xc = x - mu
    var = jnp.mean((xc - jnp.mean(xc, axis=-1, keepdims=True)) ** 2,
                   axis=-1, keepdims=True)              # torch.var(unbiased=False)
    std = jnp.sqrt(var + 1e-5)
    xn_ref[...] = xc / std
    mean_ref[...] = mu
    std_ref[...] = std


def pallas_instance_norm(x_bct):
    B, C, Tl = x_bct.shape
    return pl.pallas_call(
        _instance_norm_kernel,
        out_shape=(jax.ShapeDtypeStruct((B, C, Tl), jnp.float32),
                   jax.ShapeDtypeStruct((B, C, 1), jnp.float32),
                   jax.ShapeDtypeStruct((B, C, 1), jnp.float32)),
    )(x_bct.astype(jnp.float32))


# ----------------------------------------------------------------------------
# Linear projections: K-tiled GEMM, f32 VMEM accumulator, bf16 MXU operands,
# bias + drop-channel row mask fused into the epilogue
# ----------------------------------------------------------------------------
def _dense_kernel(x_ref, w_ref, b_ref, m_ref, o_ref, acc_ref):
    @pl.when(pl.program_id(0) == 0)
    def _():
        acc_ref[...] = jnp.zeros_like(acc_ref)

    acc_ref[...] += jnp.dot(x_ref[...], w_ref[...],
                            preferred_element_type=jnp.float32)

    @pl.when(pl.program_id(0) == pl.num_programs(0) - 1)
    def _():
        o_ref[...] = (acc_ref[...] + b_ref[...]) * m_ref[...]


@functools.lru_cache(maxsize=None)
def _build_dense_call(Mrows, Kp, N, tk):
    return pl.pallas_call(
        _dense_kernel,
        out_shape=jax.ShapeDtypeStruct((Mrows, N), jnp.float32),
        grid=(Kp // tk,),
        in_specs=[pl.BlockSpec((Mrows, tk), lambda k: (0, k)),
                  pl.BlockSpec((tk, N), lambda k: (k, 0)),
                  pl.BlockSpec((1, N), lambda k: (0, 0)),
                  pl.BlockSpec((Mrows, 1), lambda k: (0, 0))],
        out_specs=pl.BlockSpec((Mrows, N), lambda k: (0, 0)),
        scratch_shapes=[pltpu.VMEM((Mrows, N), jnp.float32)],
        compiler_params=pltpu.CompilerParams(
            dimension_semantics=("arbitrary",)),
    )


def pallas_dense(x_bf16, w_bf16, b, row_mask):
    """(M, K) @ (K, N) + b, K-tiled.  K is zero-padded to a tile multiple so
    the real model's prime T=4001 still gets a double-buffered K pipeline
    (4001 -> 4096, tk=512); activations arrive bf16 from the wrapper."""
    Mrows, K = x_bf16.shape
    N = w_bf16.shape[1]
    tk = K if K <= 512 else 512
    Kp = pl.cdiv(K, tk) * tk
    if Kp != K:
        x_bf16 = jnp.pad(x_bf16, ((0, 0), (0, Kp - K)))
        w_bf16 = jnp.pad(w_bf16, ((0, Kp - K), (0, 0)))
    call = _build_dense_call(Mrows, Kp, N, tk)
    return call(x_bf16, w_bf16,
                b.reshape(1, N).astype(jnp.float32),
                row_mask.astype(jnp.float32))


# ----------------------------------------------------------------------------
# FFT_for_Period (plain JAX; selected periods define static shapes)
# ----------------------------------------------------------------------------
def fft_for_period(x_bct, k):
    xf = jnp.fft.rfft(x_bct, axis=-1)              # FFT over time (last axis)
    amp = jnp.abs(xf)                              # (B, C, F)
    freq = amp.mean(axis=(0, 1)).at[0].set(0.0)    # (F,)
    _, top = jax.lax.top_k(freq, k)
    # TODO(synk): host round-trip kept to mirror the reference module's
    # `top_list.detach().cpu().numpy()` — the selected periods define STATIC
    # reshape/conv shapes.  Removing it needs a fixed candidate-period set or
    # a static max-length + dynamic-shift kernel (changes semantics).
    top = np.asarray(jax.device_get(top))
    period = x_bct.shape[-1] // top
    period_weight = amp.mean(axis=1)[:, top]       # (B, k)
    return period, period_weight


# ----------------------------------------------------------------------------
# TimesBlock / TimesAE forward (channels-first activations)
# ----------------------------------------------------------------------------
def times_block(x_bct, bp, ln_g, ln_b, cfg, *, apply_ln):
    B, C, Tl = x_bct.shape
    keff = 2 * cfg["incep_n_kernels"] - 1
    k = cfg["k"]
    periods, period_weight = fft_for_period(x_bct, k)
    pw = jax.nn.softmax(period_weight, axis=1)                   # (B, k)

    out = x_bct                                                  # residual base
    for i in range(k):
        period = int(periods[i])
        length = -(-Tl // period) * period                       # ceil to period
        if length != Tl:
            xi = jnp.concatenate(
                [x_bct, jnp.zeros((B, C, length - Tl), x_bct.dtype)], axis=-1)
        else:
            xi = x_bct
        out = fused_times_branch(
            xi, out, pw[:, i:i + 1],
            _tap_masks(length // period, period, keff),
            bp["w1"], bp["b1"], bp["w2"], bp["b2"], ln_g, ln_b,
            shifts=_tap_shifts(period, keff),
            apply_ln=(apply_ln and i == k - 1),   # LayerNorm fused on last branch
            donate=(i > 0))
    return out


def times_ae_forward(x_btc, params, cfg):
    # Single layout change up front: (B, T, C) -> (B, C, T) so time is
    # lane-dense everywhere.
    x_bct = jnp.transpose(x_btc, (0, 2, 1))
    enc, means, stdev = pallas_instance_norm(x_bct)

    for i in range(cfg["n_layers"]):
        enc = times_block(enc, params["enc_blocks"][i],
                          params["ln_g"], params["ln_b"], cfg, apply_ln=True)

    B, C, Tl = enc.shape
    # encoder projection (T -> HIDDEN); drop_channels folded into the epilogue
    keep = np.ones((B, C), np.float32)
    for c in cfg["drop_channels"]:
        keep[:, c] = 0.0
    keep = jnp.asarray(keep.reshape(B * C, 1))
    enc2d = pallas_dense(enc.reshape(B * C, Tl).astype(jnp.bfloat16),
                         params["W_enc"], params["b_enc"], keep)
    enc_out = enc2d.reshape(B, C, -1)                            # (B, C, HIDDEN)

    # decoder projection (HIDDEN -> T)
    dec = pallas_dense(enc2d.astype(jnp.bfloat16),
                       params["W_dec"], params["b_dec"],
                       jnp.ones((B * C, 1), jnp.float32)).reshape(B, C, Tl)

    for i in range(cfg["n_layers"]):
        dec = times_block(dec, params["dec_blocks"][i],
                          params["ln_g"], params["ln_b"], cfg, apply_ln=True)

    # instance de-normalization and back to (B, T, C) for the decoded output
    dec_out = jnp.transpose(dec * stdev + means, (0, 2, 1))
    return enc_out, dec_out


# ----------------------------------------------------------------------------
# Deterministic parameter init (shapes follow the module's __init__)
# ----------------------------------------------------------------------------
def init_params(key, cfg):
    C = cfg["n_origin_channel"]
    M = cfg["n_block_middle"]
    nk = cfg["incep_n_kernels"]
    keff = 2 * nk - 1

    def incep(key, cin, cout):
        # Inception_Block_V1 == average of num_kernels 'same' convs (sizes
        # 1,3,...) == ONE keff x keff conv with averaged zero-padded kernels
        # (bias 0), pre-flattened to (cout, keff^2*cin) bf16 so each conv is a
        # single stacked-tap MXU GEMM in the branch kernel.
        w_eff = jnp.zeros((keff, keff, cin, cout), jnp.float32)
        for i in range(nk):
            ks = 2 * i + 1
            std = float(np.sqrt(2.0 / (cout * ks * ks)))   # kaiming fan_out/relu
            key, sub = jax.random.split(key)
            w = jax.random.normal(sub, (ks, ks, cin, cout), jnp.float32) * std
            off = (keff - ks) // 2
            w_eff = w_eff.at[off:off + ks, off:off + ks].add(w)
        w_eff = w_eff / nk
        w_flat = jnp.transpose(w_eff, (3, 0, 1, 2)).reshape(cout, keff * keff * cin)
        return key, w_flat.astype(jnp.bfloat16), jnp.zeros((cout, 1), jnp.float32)

    def block(key):
        key, w1, b1 = incep(key, C, M)
        key, w2, b2 = incep(key, M, C)
        return key, dict(w1=w1, b1=b1, w2=w2, b2=b2)

    enc_blocks, dec_blocks = [], []
    for _ in range(cfg["n_layers"]):
        key, p = block(key)
        enc_blocks.append(p)
    for _ in range(cfg["n_layers"]):
        key, p = block(key)
        dec_blocks.append(p)

    key, k1, k2, k3, k4 = jax.random.split(key, 5)
    be = 1.0 / np.sqrt(T_LEN)
    bd = 1.0 / np.sqrt(HIDDEN_UNIT)
    return dict(
        enc_blocks=enc_blocks,
        dec_blocks=dec_blocks,
        W_enc=jax.random.uniform(k1, (T_LEN, HIDDEN_UNIT), jnp.float32,
                                 -be, be).astype(jnp.bfloat16),
        b_enc=jax.random.uniform(k2, (HIDDEN_UNIT,), jnp.float32, -be, be),
        W_dec=jax.random.uniform(k3, (HIDDEN_UNIT, T_LEN), jnp.float32,
                                 -bd, bd).astype(jnp.bfloat16),
        b_dec=jax.random.uniform(k4, (T_LEN,), jnp.float32, -bd, bd),
        ln_g=jnp.ones((C, 1), jnp.float32),
        ln_b=jnp.zeros((C, 1), jnp.float32),
    )


if __name__ == "__main__":
    key = jax.random.PRNGKey(0)
    key, xkey = jax.random.split(key)
    x = jax.random.normal(xkey, (BATCH, T_LEN, CFG["n_origin_channel"]),
                          jnp.float32)

    params = init_params(key, CFG)
    enc_out, dec_out = times_ae_forward(x, params, CFG)
    jax.block_until_ready((enc_out, dec_out))

    assert enc_out.shape == (BATCH, CFG["n_origin_channel"], HIDDEN_UNIT)
    assert dec_out.shape == (BATCH, T_LEN, CFG["n_origin_channel"])
    assert bool(jnp.all(jnp.isfinite(enc_out)))
    assert bool(jnp.all(jnp.isfinite(dec_out)))
    print("KERNEL_OK")
</pallas_src>

<mosaic_0001>
module attributes {stable_mosaic.version = 11 : i64} {
  func.func @_instance_norm_kernel(%arg0: memref<2x4x32xf32, #tpu.memory_space<vmem>>, %arg1: memref<2x4x32xf32, #tpu.memory_space<vmem>>, %arg2: memref<2x4x1xf32, #tpu.memory_space<vmem>>, %arg3: memref<2x4x1xf32, #tpu.memory_space<vmem>>) attributes {dimension_semantics = [], scalar_prefetch = 0 : i64, scratch_operands = 0 : i64, tpu.core_type = #tpu.core_type<tc>} {
    %c0 = arith.constant 0 : index
    %c0_0 = arith.constant 0 : index
    %c0_1 = arith.constant 0 : index
    %0 = vector.load %arg0[%c0, %c0_0, %c0_1] : memref<2x4x32xf32, #tpu.memory_space<vmem>>, vector<2x4x32xf32>
    %cst = arith.constant dense<0.000000e+00> : vector<2x4xf32>
    %1 = vector.multi_reduction <add>, %0, %cst [2] : vector<2x4x32xf32> to vector<2x4xf32>
    %2 = vector.shape_cast %1 : vector<2x4xf32> to vector<2x4x1xf32>
    %cst_2 = arith.constant 3.200000e+01 : f32
    %3 = vector.broadcast %cst_2 : f32 to vector<2x4x1xf32>
    %4 = arith.divf %2, %3 : vector<2x4x1xf32>
    %5 = vector.broadcast %4 : vector<2x4x1xf32> to vector<2x4x32xf32>
    %6 = arith.subf %0, %5 : vector<2x4x32xf32>
    %cst_3 = arith.constant dense<0.000000e+00> : vector<2x4xf32>
    %7 = vector.multi_reduction <add>, %6, %cst_3 [2] : vector<2x4x32xf32> to vector<2x4xf32>
    %8 = vector.shape_cast %7 : vector<2x4xf32> to vector<2x4x1xf32>
    %cst_4 = arith.constant 3.200000e+01 : f32
    %9 = vector.broadcast %cst_4 : f32 to vector<2x4x1xf32>
    %10 = arith.divf %8, %9 : vector<2x4x1xf32>
    %11 = vector.broadcast %10 : vector<2x4x1xf32> to vector<2x4x32xf32>
    %12 = arith.subf %6, %11 : vector<2x4x32xf32>
    %13 = arith.mulf %12, %12 : vector<2x4x32xf32>
    %cst_5 = arith.constant dense<0.000000e+00> : vector<2x4xf32>
    %14 = vector.multi_reduction <add>, %13, %cst_5 [2] : vector<2x4x32xf32> to vector<2x4xf32>
    %15 = vector.shape_cast %14 : vector<2x4xf32> to vector<2x4x1xf32>
    %cst_6 = arith.constant 3.200000e+01 : f32
    %16 = vector.broadcast %cst_6 : f32 to vector<2x4x1xf32>
    %17 = arith.divf %15, %16 : vector<2x4x1xf32>
    %cst_7 = arith.constant 9.99999974E-6 : f32
    %18 = vector.broadcast %cst_7 : f32 to vector<2x4x1xf32>
    %19 = arith.addf %17, %18 : vector<2x4x1xf32>
    %20 = math.sqrt %19 : vector<2x4x1xf32>
    %21 = vector.broadcast %20 : vector<2x4x1xf32> to vector<2x4x32xf32>
    %22 = arith.divf %6, %21 : vector<2x4x32xf32>
    %c0_8 = arith.constant 0 : index
    %c0_9 = arith.constant 0 : index
    %c0_10 = arith.constant 0 : index
    %23 = vector.load %arg1[%c0_8, %c0_9, %c0_10] : memref<2x4x32xf32, #tpu.memory_space<vmem>>, vector<2x4x32xf32>
    tpu.vector_store %arg1[%c0_8, %c0_9, %c0_10], %22 {strides = array<i32>} : memref<2x4x32xf32, #tpu.memory_space<vmem>>, vector<2x4x32xf32>,
    %c0_11 = arith.constant 0 : index
    %c0_12 = arith.constant 0 : index
    %c0_13 = arith.constant 0 : index
    %24 = vector.load %arg2[%c0_11, %c0_12, %c0_13] : memref<2x4x1xf32, #tpu.memory_space<vmem>>, vector<2x4x1xf32>
    tpu.vector_store %arg2[%c0_11, %c0_12, %c0_13], %4 {strides = array<i32>} : memref<2x4x1xf32, #tpu.memory_space<vmem>>, vector<2x4x1xf32>,
    %c0_14 = arith.constant 0 : index
    %c0_15 = arith.constant 0 : index
    %c0_16 = arith.constant 0 : index
    %25 = vector.load %arg3[%c0_14, %c0_15, %c0_16] : memref<2x4x1xf32, #tpu.memory_space<vmem>>, vector<2x4x1xf32>
    tpu.vector_store %arg3[%c0_14, %c0_15, %c0_16], %20 {strides = array<i32>} : memref<2x4x1xf32, #tpu.memory_space<vmem>>, vector<2x4x1xf32>,
    return
  }
}

</mosaic_0001>

<bundles_post_ra>
// kernel: tpu_custom_call.1
= control target key start
LH: loop header
LB: loop body
LE: loop exit
PB: predicated region body
PF: predicated region fallthrough
CT: control target
= control target key end

     0   :  { %9 = vsyncpa [#allocation3], 0  ;;  %s228_s0 = inlined_call_operand.hbm [shape: f32[2,4,32], index: 0, kind: input, shape index: {}]   ;;  %s229_s1 = inlined_call_operand.hbm [shape: f32[2,4,32], index: 1, kind: output, shape index: {0}]   ;;  %s230_s2 = inlined_call_operand.vmem [shape: f32[2,4,1], index: 2, kind: output, shape index: {1}]   ;;  %s231_s3 = inlined_call_operand.vmem [shape: f32[2,4,1], index: 3, kind: output, shape index: {2}]  }
   0x1   :  { %10 = vsyncpa [#allocation4], 0  ;;  %s168_s12 = smov [#allocation2]  }
   0x2   :  { %s16_s13 = sshll.u32 %s168_s12, 4  ;;  %s17_s13 = int_to_ptr.vmem [resolvable:$true] %s16_s13 }
   0x3   :  { %s132_s14 = scalar_lea.vmem %s17_s13, 128  ;;  %p137_p1 = scmp.lt.s32.totalorder %s17_s13, %s17_s13 }
   0x4   :  { %p133_p0 = scmp.ne.s32.totalorder %s17_s13, %s132_s14  ;;  %p138_p2 = scmp.lt.s32.totalorder %s132_s14, %s132_s14 }
   0x6   :  { %p139_p3 = por %p138_p2, %p137_p1 }
   0x8   :  { %p140_p4 = pnand %p139_p3, %p133_p0 }
   0xa   :  { %143 = shalt.err (!%p140_p4)
}
   0xb   :  { %s169_s15 = smov 64   ;;  %s170_s16 = smov 4  }
   0xc   :  { %22 = dma.hbm_to_vmem [thread:$0]  %s228_s0, 128, %s17_s13, [#allocation3], %s169_s15, %s169_s15, %s170_s16  }
   0xd   :  { %164 = dma.done.wait [#allocation3], 128  }
   0xe   :  { %165 = vsyncadd [#allocation3], 4294967168  ;;  %vm28_vm0 = vcmask 257024   ;;  %v26_v0 = vld [vmem:[#allocation2] sm:$0xf]  ;;  %vm82_vm1 = vcmask 3072  }
   0xf   :  { %v27_v1 = vld [vmem:[#allocation2 + $0x4] sm:$0xf]  ;;  %v29_v2 = vsel %vm28_vm0, %v26_v0, 0.0  ;;  %s171_s25 = smov [#allocation5]  }
  0x10   :  { %30 = vadd.xlane.f32.xlu0 %v29_v2  ;;  %v32_v3 = vsel %vm28_vm0, %v27_v1, 0.0  ;;  %s92_s26 = sshll.u32 %s171_s25, 4  ;;  %s93_s26 = int_to_ptr.vmem [resolvable:$true] %s92_s26 }
  0x11   :  { %s144_s27 = scalar_lea.vmem %s93_s26, 128  ;;  %p149_p6 = scmp.lt.s32.totalorder %s93_s26, %s93_s26 }
  0x12   :  { %p145_p5 = scmp.ne.s32.totalorder %s93_s26, %s144_s27  ;;  %p150_p7 = scmp.lt.s32.totalorder %s144_s27, %s144_s27 }
  0x14   :  { %33 = vadd.xlane.f32.xlu0 %v32_v3  ;;  %p151_p8 = por %p150_p7, %p149_p6 }
  0x16   :  { %p152_p9 = pnand %p151_p8, %p145_p5 }
  0x99   :  { %v31_v4 = vpop.xlane.xlu0 %30 }
  0x9a   :  { %v36_v5 = vmul.f32 0.03125, %v31_v4 }
  0x9c   :  { %v38_v6 = vsub.f32 %v26_v0, %v36_v5  ;;  %83 = vst.msk [vmem:[%s230_s2] sm:$0xf] %vm82_vm1, %v36_v5 }
  0x9d   :  { %v34_v7 = vpop.xlane.xlu0 %33 }
  0x9e   :  { %v37_v8 = vmul.f32 0.03125, %v34_v7  ;;  %v40_v9 = vsel %vm28_vm0, %v38_v6, 0.0 }
  0x9f   :  { %41 = vadd.xlane.f32.xlu1 %v40_v9 }
  0xa0   :  { %v39_v10 = vsub.f32 %v27_v1, %v37_v8  ;;  %84 = vst.msk [vmem:[%s230_s2 + $0x4] sm:$0xf] %vm82_vm1, %v37_v8 }
  0xa2   :  { %v43_v11 = vsel %vm28_vm0, %v39_v10, 0.0 }
  0xa3   :  { %44 = vadd.xlane.f32.xlu1 %v43_v11 }
 0x128   :  { %v42_v12 = vpop.xlane.xlu1 %41 }
 0x129   :  { %v46_v13 = vmul.f32 0.03125, %v42_v12 }
 0x12b   :  { %v48_v14 = vsub.f32 %v38_v6, %v46_v13 }
 0x12c   :  { %v45_v15 = vpop.xlane.xlu1 %44 }
 0x12d   :  { %v47_v16 = vmul.f32 0.03125, %v45_v15  ;;  %v50_v17 = vmul.f32 %v48_v14, %v48_v14 }
 0x12f   :  { %v49_v18 = vsub.f32 %v39_v10, %v47_v16  ;;  %v52_v19 = vsel %vm28_vm0, %v50_v17, 0.0 }
 0x130   :  { %53 = vadd.xlane.f32.xlu0 %v52_v19 }
 0x131   :  { %v51_v20 = vmul.f32 %v49_v18, %v49_v18 }
 0x133   :  { %v55_v21 = vsel %vm28_vm0, %v51_v20, 0.0 }
 0x134   :  { %56 = vadd.xlane.f32.xlu1 %v55_v21 }
 0x1b9   :  { %v54_v22 = vpop.xlane.xlu0 %53 }
 0x1ba   :  { %v58_v23 = vmul.f32 0.03125, %v54_v22 }
 0x1bc   :  { %v60_v24 = vadd.f32 1e-05, %v58_v23 }
 0x1bd   :  { %v57_v25 = vpop.xlane.xlu1 %56 }
 0x1be   :  { %116 = vrsqrt.f32 %v60_v24  ;;  %v59_v26 = vmul.f32 0.03125, %v57_v25  ;;  %vm64_vm2 = vcmp.eq.f32.partialorder %v60_v24, inf  ;;  %v67_v30 = vand.u32 2147483648, %v60_v24 }
 0x1bf   :  { %vm66_vm3 = vcmp.eq.f32.partialorder %v60_v24, 0.0 }
 0x1c0   :  { %v61_v27 = vadd.f32 1e-05, %v59_v26 }
 0x1c2   :  { %118 = vrsqrt.f32 %v61_v27  ;;  %vm71_vm4 = vcmp.eq.f32.partialorder %v61_v27, inf  ;;  %v74_v35 = vand.u32 2147483648, %v61_v27  ;;  %vm73_vm5 = vcmp.eq.f32.partialorder %v61_v27, 0.0 }
 0x1cb   :  { %v117_v28 = vpop.eup %116 }
 0x1cc   :  { %v63_v29 = vmul.f32 %v117_v28, %v60_v24 }
 0x1ce   :  { %v65_v31 = vsel %vm64_vm2, %v60_v24, %v63_v29 }
 0x1cf   :  { %v68_v32 = vsel %vm66_vm3, %v67_v30, %v65_v31  ;;  %v119_v33 = vpop.eup %118 }
 0x1d0   :  { %120 = vrcp.f32 %v68_v32  ;;  %85 = vst.msk [vmem:[%s231_s3] sm:$0xf] %vm82_vm1, %v68_v32  ;;  %v70_v34 = vmul.f32 %v119_v33, %v61_v27 }
 0x1d2   :  { %v72_v36 = vsel %vm71_vm4, %v61_v27, %v70_v34 }
 0x1d3   :  { %v75_v37 = vsel %vm73_vm5, %v74_v35, %v72_v36 }
 0x1d4   :  { %122 = vrcp.f32 %v75_v37  ;;  %86 = vst.msk [vmem:[%s231_s3 + $0x4] sm:$0xf] %vm82_vm1, %v75_v37 }
 0x1dd   :  { %v121_v38 = vpop.eup %120 }
 0x1de   :  { %v77_v39 = vmul.f32 %v121_v38, %v38_v6 }
 0x1e0   :  { %80 = vst.msk [vmem:[#allocation5] sm:$0xf] %vm28_vm0, %v77_v39 }
 0x1e1   :  { %v123_v40 = vpop.eup %122 }
 0x1e2   :  { %v79_v41 = vmul.f32 %v123_v40, %v39_v10 }
 0x1e4   :  { %81 = vst.msk [vmem:[#allocation5 + $0x4] sm:$0xf] %vm28_vm0, %v79_v41 }
 0x1e5   :  { %155 = shalt.err (!%p152_p9)
}
 0x1e6   :  { %98 = dma.vmem_to_hbm [thread:$0]  %s93_s26, 128, %s229_s1, [#allocation4], %s169_s15, %s169_s15, %s170_s16  }
 0x1e7   :  { %166 = dma.done.wait [#allocation4], 128  }
 0x1e8   :  { %167 = vsyncadd [#allocation4], 4294967168 }
 0x1e9   :  { %110 = vsyncpa [#allocation3], 1 }
 0x1ea   :  { %111 = vsyncpa [#allocation4], 1 }

</bundles_post_ra>
